<compile_context>
chip_gen: v7x
topology: tpu7x:2x2x1
jax: 0.10.0
libtpu: 0.0.40
codegen_flags: <defaults>
</compile_context>

<pallas_src>
import functools

import jax
import jax.numpy as jnp
from jax.experimental import pallas as pl
from jax.experimental.pallas import tpu as pltpu

HIDDEN_SIZES = [128, 128, 64, 32, 16, 8, 8, 8]
N_LAYERS = 9            # 8 hidden + 1 output layer
PAD = 128               # every feature dim padded to 128 lanes
TB_MAX = 2048           # max batch tile (sublane axis)


# ---------------------------------------------------------------------------
# Kernel
# ---------------------------------------------------------------------------
def _mlp_kernel(x_ref, w_ref, b_ref, out_ref):
    """x_ref: (TB, PAD) bf16; w_ref: (9, PAD, PAD) bf16; b_ref: (9, 1, PAD) f32;
    out_ref: (TB, PAD) bf16.

    TB is a multiple of 16; the tile is split into two independent sub-tiles
    so the per-layer bias+ReLU+cast epilogue of one can overlap the MXU work
    of the other.
    """
    half = x_ref.shape[0] // 2
    hs = [x_ref[:half, :], x_ref[half:, :]]                 # bf16 sub-tiles
    for i in range(N_LAYERS):                               # static unroll
        w = w_ref[i]                                        # (PAD, PAD) bf16
        b = b_ref[i]                                        # (1, PAD)  f32
        nxt = []
        for h in hs:                                        # two indep. chains
            a = jnp.dot(h, w, preferred_element_type=jnp.float32) + b
            if i < N_LAYERS - 1:
                a = jnp.maximum(a, 0.0)                     # ReLU, layers 1..8
            nxt.append(a.astype(jnp.bfloat16))              # bf16 for next MXU
        hs = nxt
    out_ref[:half, :] = hs[0]
    out_ref[half:, :] = hs[1]


# ---------------------------------------------------------------------------
# Helpers
# ---------------------------------------------------------------------------
def _round_up(n, m):
    return -(-n // m) * m


def _pad2d(a, rows, cols):
    return jnp.pad(a, ((0, rows - a.shape[0]), (0, cols - a.shape[1])))


@functools.lru_cache(maxsize=1)
def _num_tensorcores():
    """2 on v7x-class chips (2 TensorCores/chip), else 1 (v5e/v6e)."""
    try:
        kind = jax.devices()[0].device_kind.lower()
    except Exception:
        return 1
    return 2 if "v7" in kind else 1


def _choose_tb(batch, num_tc):
    """Batch tile: multiple of 16 (so the kernel's 2-way sub-tile split keeps
    8-sublane alignment), <= TB_MAX. Single-TC chips get one big tile when it
    fits; 2-TC chips get an even number of balanced grid steps."""
    bp = _round_up(batch, 16)
    if num_tc <= 1 and bp <= TB_MAX:
        return bp
    steps = max(1, -(-bp // TB_MAX))
    if num_tc >= 2:
        steps = max(2, steps)
        if steps % 2:
            steps += 1
    tb = _round_up(-(-bp // steps), 16)
    while tb > TB_MAX:                      # rounding pushed us over: add steps
        steps += 2 if num_tc >= 2 else 1
        tb = _round_up(-(-bp // steps), 16)
    return tb


def pack_params(weights, biases):
    """Pre-pack once (outside the per-call path): 9 weights (in_i, out_i) ->
    one (9,128,128) bf16 array; 9 biases (out_i,) -> one (9,1,128) f32 array.
    Padding is exact zero so padded lanes never contaminate real outputs."""
    w_all = jnp.stack(
        [_pad2d(w.astype(jnp.float32), PAD, PAD) for w in weights]
    ).astype(jnp.bfloat16)                                   # (9, 128, 128) bf16
    b_all = jnp.stack(
        [_pad2d(b.astype(jnp.float32)[None, :], 1, PAD) for b in biases]
    )                                                        # (9, 1, 128) f32
    return w_all, b_all


# ---------------------------------------------------------------------------
# Forward
# ---------------------------------------------------------------------------
@functools.partial(jax.jit, static_argnames=("class_number",))
def net_forward(x, w_all, b_all, class_number):
    """x: (B, input_size). w_all: (9,128,128) bf16, b_all: (9,1,128) f32 from
    pack_params(). Returns (B, class_number) f32."""
    B, in_dim = x.shape
    if in_dim > PAD:
        # TODO(synk): input_size > 128 would need K-tiling of the first layer.
        raise ValueError("input_size > 128 not supported by this kernel")
    if class_number > PAD:
        raise ValueError("class_number > 128 not supported by this kernel")

    TB = _choose_tb(B, _num_tensorcores())
    Bp = _round_up(B, TB)

    # bf16 activations in (halves input DMA + VMEM tile); zero padding.
    x_p = _pad2d(x.astype(jnp.bfloat16), Bp, PAD)

    cost = pl.CostEstimate(
        flops=2 * Bp * PAD * PAD * N_LAYERS,
        transcendentals=0,
        bytes_accessed=(Bp * PAD * 2          # x in   (bf16)
                        + Bp * PAD * 2        # out    (bf16)
                        + w_all.size * 2      # bf16 weights
                        + b_all.size * 4),    # f32 biases
    )

    out_p = pl.pallas_call(
        _mlp_kernel,
        out_shape=jax.ShapeDtypeStruct((Bp, PAD), jnp.bfloat16),
        grid_spec=pltpu.PrefetchScalarGridSpec(
            num_scalar_prefetch=0,
            grid=(Bp // TB,),
            in_specs=[
                pl.BlockSpec((TB, PAD), lambda i: (i, 0)),
                # Constant index_map -> weights/biases DMA'd once for the grid.
                pl.BlockSpec((N_LAYERS, PAD, PAD), lambda i: (0, 0, 0)),
                pl.BlockSpec((N_LAYERS, 1, PAD), lambda i: (0, 0, 0)),
            ],
            out_specs=pl.BlockSpec((TB, PAD), lambda i: (i, 0)),
        ),
        compiler_params=pltpu.CompilerParams(
            dimension_semantics=("parallel",)),
        cost_estimate=cost,
    )(x_p, w_all, b_all)

    return out_p[:B, :class_number].astype(jnp.float32)


# ---------------------------------------------------------------------------
# Params / reference
# ---------------------------------------------------------------------------
def init_params(key, input_size, class_number):
    """Deterministic init matching torch.nn.Linear's default
    U(-1/sqrt(in), 1/sqrt(in)). Weights returned already transposed to (in, out)."""
    sizes = [input_size] + HIDDEN_SIZES + [class_number]
    weights, biases = [], []
    for i in range(N_LAYERS):
        fan_in, fan_out = sizes[i], sizes[i + 1]
        key, kw, kb = jax.random.split(key, 3)
        bound = 1.0 / jnp.sqrt(jnp.float32(fan_in))
        w = jax.random.uniform(kw, (fan_in, fan_out), jnp.float32, -bound, bound)
        b = jax.random.uniform(kb, (fan_out,), jnp.float32, -bound, bound)
        weights.append(w)
        biases.append(b)
    return weights, biases


def reference_forward(x, weights, biases):
    """Pure f32 reference (matches the torch module's forward)."""
    h = x
    for i in range(N_LAYERS):
        h = h @ weights[i] + biases[i]
        if i < N_LAYERS - 1:
            h = jnp.maximum(h, 0.0)
    return h


if __name__ == "__main__":
    input_size = 32
    class_number = 4
    batch = 64

    key = jax.random.PRNGKey(0)
    key, kx = jax.random.split(key)
    x = jax.random.normal(kx, (batch, input_size), dtype=jnp.float32)

    weights, biases = init_params(key, input_size, class_number)
    w_all, b_all = pack_params(weights, biases)       # packed once, reused

    out = net_forward(x, w_all, b_all, class_number)
    out = jax.block_until_ready(out)

    ref = reference_forward(x, weights, biases)
    assert out.shape == (batch, class_number), out.shape
    # bf16 matmul operands / activations / output (f32 accumulation) ->
    # loosened tolerance vs the pure-f32 reference.
    assert jnp.allclose(out, ref, atol=3e-2, rtol=3e-2), (
        float(jnp.max(jnp.abs(out - ref))))

    print("KERNEL_OK")
</pallas_src>

<mosaic_0001>
module attributes {stable_mosaic.version = 11 : i64} {
  func.func @_mlp_kernel(%arg0: i32, %arg1: memref<64x128xbf16, #tpu.memory_space<vmem>>, %arg2: memref<9x128x128xbf16, #tpu.memory_space<vmem>>, %arg3: memref<9x1x128xf32, #tpu.memory_space<vmem>>, %arg4: memref<64x128xbf16, #tpu.memory_space<vmem>>) attributes {dimension_semantics = [#tpu.dimension_semantics<parallel>], iteration_bounds = array<i64: 1>, scalar_prefetch = 0 : i64, scratch_operands = 0 : i64, tpu.core_type = #tpu.core_type<tc>, window_params = [{transform_indices = @transform_0, window_bounds = array<i64: 64, 128>}, {pipeline_mode = #tpu.pipeline_mode<synchronous>, transform_indices = @transform_1, window_bounds = array<i64: 9, 128, 128>}, {pipeline_mode = #tpu.pipeline_mode<synchronous>, transform_indices = @transform_2, window_bounds = array<i64: 9, 1, 128>}, {transform_indices = @transform_3, window_bounds = array<i64: 64, 128>}]} {
    %c0 = arith.constant 0 : index
    %c0_0 = arith.constant 0 : index
    %0 = vector.load %arg1[%c0, %c0_0] : memref<64x128xbf16, #tpu.memory_space<vmem>>, vector<32x128xbf16>
    %c32 = arith.constant 32 : index
    %c0_1 = arith.constant 0 : index
    %1 = vector.load %arg1[%c32, %c0_1] : memref<64x128xbf16, #tpu.memory_space<vmem>>, vector<32x128xbf16>
    %c0_2 = arith.constant 0 : index
    %c0_3 = arith.constant 0 : index
    %c0_4 = arith.constant 0 : index
    %2 = vector.load %arg2[%c0_2, %c0_3, %c0_4] : memref<9x128x128xbf16, #tpu.memory_space<vmem>>, vector<1x128x128xbf16>
    %3 = vector.shape_cast %2 : vector<1x128x128xbf16> to vector<128x128xbf16>
    %c0_5 = arith.constant 0 : index
    %c0_6 = arith.constant 0 : index
    %c0_7 = arith.constant 0 : index
    %4 = vector.load %arg3[%c0_5, %c0_6, %c0_7] : memref<9x1x128xf32, #tpu.memory_space<vmem>>, vector<1x1x128xf32>
    %5 = vector.shape_cast %4 : vector<1x1x128xf32> to vector<1x128xf32>
    %cst = arith.constant dense<0.000000e+00> : vector<32x128xf32>
    %6 = tpu.matmul %0, %3, %cst {dimension_numbers = #tpu.dot_dimension_numbers<[1], [0], [0], [1], [0, 0, 1, 1], [], []>} : vector<32x128xbf16>, vector<128x128xbf16>, vector<32x128xf32> -> vector<32x128xf32>
    %7 = vector.broadcast %5 : vector<1x128xf32> to vector<32x128xf32>
    %8 = arith.addf %6, %7 : vector<32x128xf32>
    %cst_8 = arith.constant 0.000000e+00 : f32
    %9 = vector.broadcast %cst_8 : f32 to vector<32x128xf32>
    %10 = arith.maximumf %8, %9 : vector<32x128xf32>
    %11 = arith.truncf %10 : vector<32x128xf32> to vector<32x128xbf16>
    %cst_9 = arith.constant dense<0.000000e+00> : vector<32x128xf32>
    %12 = tpu.matmul %1, %3, %cst_9 {dimension_numbers = #tpu.dot_dimension_numbers<[1], [0], [0], [1], [0, 0, 1, 1], [], []>} : vector<32x128xbf16>, vector<128x128xbf16>, vector<32x128xf32> -> vector<32x128xf32>
    %13 = vector.broadcast %5 : vector<1x128xf32> to vector<32x128xf32>
    %14 = arith.addf %12, %13 : vector<32x128xf32>
    %cst_10 = arith.constant 0.000000e+00 : f32
    %15 = vector.broadcast %cst_10 : f32 to vector<32x128xf32>
    %16 = arith.maximumf %14, %15 : vector<32x128xf32>
    %17 = arith.truncf %16 : vector<32x128xf32> to vector<32x128xbf16>
    %c1 = arith.constant 1 : index
    %c0_11 = arith.constant 0 : index
    %c0_12 = arith.constant 0 : index
    %18 = vector.load %arg2[%c1, %c0_11, %c0_12] : memref<9x128x128xbf16, #tpu.memory_space<vmem>>, vector<1x128x128xbf16>
    %19 = vector.shape_cast %18 : vector<1x128x128xbf16> to vector<128x128xbf16>
    %c1_13 = arith.constant 1 : index
    %c0_14 = arith.constant 0 : index
    %c0_15 = arith.constant 0 : index
    %20 = vector.load %arg3[%c1_13, %c0_14, %c0_15] : memref<9x1x128xf32, #tpu.memory_space<vmem>>, vector<1x1x128xf32>
    %21 = vector.shape_cast %20 : vector<1x1x128xf32> to vector<1x128xf32>
    %cst_16 = arith.constant dense<0.000000e+00> : vector<32x128xf32>
    %22 = tpu.matmul %11, %19, %cst_16 {dimension_numbers = #tpu.dot_dimension_numbers<[1], [0], [0], [1], [0, 0, 1, 1], [], []>} : vector<32x128xbf16>, vector<128x128xbf16>, vector<32x128xf32> -> vector<32x128xf32>
    %23 = vector.broadcast %21 : vector<1x128xf32> to vector<32x128xf32>
    %24 = arith.addf %22, %23 : vector<32x128xf32>
    %cst_17 = arith.constant 0.000000e+00 : f32
    %25 = vector.broadcast %cst_17 : f32 to vector<32x128xf32>
    %26 = arith.maximumf %24, %25 : vector<32x128xf32>
    %27 = arith.truncf %26 : vector<32x128xf32> to vector<32x128xbf16>
    %cst_18 = arith.constant dense<0.000000e+00> : vector<32x128xf32>
    %28 = tpu.matmul %17, %19, %cst_18 {dimension_numbers = #tpu.dot_dimension_numbers<[1], [0], [0], [1], [0, 0, 1, 1], [], []>} : vector<32x128xbf16>, vector<128x128xbf16>, vector<32x128xf32> -> vector<32x128xf32>
    %29 = vector.broadcast %21 : vector<1x128xf32> to vector<32x128xf32>
    %30 = arith.addf %28, %29 : vector<32x128xf32>
    %cst_19 = arith.constant 0.000000e+00 : f32
    %31 = vector.broadcast %cst_19 : f32 to vector<32x128xf32>
    %32 = arith.maximumf %30, %31 : vector<32x128xf32>
    %33 = arith.truncf %32 : vector<32x128xf32> to vector<32x128xbf16>
    %c2 = arith.constant 2 : index
    %c0_20 = arith.constant 0 : index
    %c0_21 = arith.constant 0 : index
    %34 = vector.load %arg2[%c2, %c0_20, %c0_21] : memref<9x128x128xbf16, #tpu.memory_space<vmem>>, vector<1x128x128xbf16>
    %35 = vector.shape_cast %34 : vector<1x128x128xbf16> to vector<128x128xbf16>
    %c2_22 = arith.constant 2 : index
    %c0_23 = arith.constant 0 : index
    %c0_24 = arith.constant 0 : index
    %36 = vector.load %arg3[%c2_22, %c0_23, %c0_24] : memref<9x1x128xf32, #tpu.memory_space<vmem>>, vector<1x1x128xf32>
    %37 = vector.shape_cast %36 : vector<1x1x128xf32> to vector<1x128xf32>
    %cst_25 = arith.constant dense<0.000000e+00> : vector<32x128xf32>
    %38 = tpu.matmul %27, %35, %cst_25 {dimension_numbers = #tpu.dot_dimension_numbers<[1], [0], [0], [1], [0, 0, 1, 1], [], []>} : vector<32x128xbf16>, vector<128x128xbf16>, vector<32x128xf32> -> vector<32x128xf32>
    %39 = vector.broadcast %37 : vector<1x128xf32> to vector<32x128xf32>
    %40 = arith.addf %38, %39 : vector<32x128xf32>
    %cst_26 = arith.constant 0.000000e+00 : f32
    %41 = vector.broadcast %cst_26 : f32 to vector<32x128xf32>
    %42 = arith.maximumf %40, %41 : vector<32x128xf32>
    %43 = arith.truncf %42 : vector<32x128xf32> to vector<32x128xbf16>
    %cst_27 = arith.constant dense<0.000000e+00> : vector<32x128xf32>
    %44 = tpu.matmul %33, %35, %cst_27 {dimension_numbers = #tpu.dot_dimension_numbers<[1], [0], [0], [1], [0, 0, 1, 1], [], []>} : vector<32x128xbf16>, vector<128x128xbf16>, vector<32x128xf32> -> vector<32x128xf32>
    %45 = vector.broadcast %37 : vector<1x128xf32> to vector<32x128xf32>
    %46 = arith.addf %44, %45 : vector<32x128xf32>
    %cst_28 = arith.constant 0.000000e+00 : f32
    %47 = vector.broadcast %cst_28 : f32 to vector<32x128xf32>
    %48 = arith.maximumf %46, %47 : vector<32x128xf32>
    %49 = arith.truncf %48 : vector<32x128xf32> to vector<32x128xbf16>
    %c3 = arith.constant 3 : index
    %c0_29 = arith.constant 0 : index
    %c0_30 = arith.constant 0 : index
    %50 = vector.load %arg2[%c3, %c0_29, %c0_30] : memref<9x128x128xbf16, #tpu.memory_space<vmem>>, vector<1x128x128xbf16>
    %51 = vector.shape_cast %50 : vector<1x128x128xbf16> to vector<128x128xbf16>
    %c3_31 = arith.constant 3 : index
    %c0_32 = arith.constant 0 : index
    %c0_33 = arith.constant 0 : index
    %52 = vector.load %arg3[%c3_31, %c0_32, %c0_33] : memref<9x1x128xf32, #tpu.memory_space<vmem>>, vector<1x1x128xf32>
    %53 = vector.shape_cast %52 : vector<1x1x128xf32> to vector<1x128xf32>
    %cst_34 = arith.constant dense<0.000000e+00> : vector<32x128xf32>
    %54 = tpu.matmul %43, %51, %cst_34 {dimension_numbers = #tpu.dot_dimension_numbers<[1], [0], [0], [1], [0, 0, 1, 1], [], []>} : vector<32x128xbf16>, vector<128x128xbf16>, vector<32x128xf32> -> vector<32x128xf32>
    %55 = vector.broadcast %53 : vector<1x128xf32> to vector<32x128xf32>
    %56 = arith.addf %54, %55 : vector<32x128xf32>
    %cst_35 = arith.constant 0.000000e+00 : f32
    %57 = vector.broadcast %cst_35 : f32 to vector<32x128xf32>
    %58 = arith.maximumf %56, %57 : vector<32x128xf32>
    %59 = arith.truncf %58 : vector<32x128xf32> to vector<32x128xbf16>
    %cst_36 = arith.constant dense<0.000000e+00> : vector<32x128xf32>
    %60 = tpu.matmul %49, %51, %cst_36 {dimension_numbers = #tpu.dot_dimension_numbers<[1], [0], [0], [1], [0, 0, 1, 1], [], []>} : vector<32x128xbf16>, vector<128x128xbf16>, vector<32x128xf32> -> vector<32x128xf32>
    %61 = vector.broadcast %53 : vector<1x128xf32> to vector<32x128xf32>
    %62 = arith.addf %60, %61 : vector<32x128xf32>
    %cst_37 = arith.constant 0.000000e+00 : f32
    %63 = vector.broadcast %cst_37 : f32 to vector<32x128xf32>
    %64 = arith.maximumf %62, %63 : vector<32x128xf32>
    %65 = arith.truncf %64 : vector<32x128xf32> to vector<32x128xbf16>
    %c4 = arith.constant 4 : index
    %c0_38 = arith.constant 0 : index
    %c0_39 = arith.constant 0 : index
    %66 = vector.load %arg2[%c4, %c0_38, %c0_39] : memref<9x128x128xbf16, #tpu.memory_space<vmem>>, vector<1x128x128xbf16>
    %67 = vector.shape_cast %66 : vector<1x128x128xbf16> to vector<128x128xbf16>
    %c4_40 = arith.constant 4 : index
    %c0_41 = arith.constant 0 : index
    %c0_42 = arith.constant 0 : index
    %68 = vector.load %arg3[%c4_40, %c0_41, %c0_42] : memref<9x1x128xf32, #tpu.memory_space<vmem>>, vector<1x1x128xf32>
    %69 = vector.shape_cast %68 : vector<1x1x128xf32> to vector<1x128xf32>
    %cst_43 = arith.constant dense<0.000000e+00> : vector<32x128xf32>
    %70 = tpu.matmul %59, %67, %cst_43 {dimension_numbers = #tpu.dot_dimension_numbers<[1], [0], [0], [1], [0, 0, 1, 1], [], []>} : vector<32x128xbf16>, vector<128x128xbf16>, vector<32x128xf32> -> vector<32x128xf32>
    %71 = vector.broadcast %69 : vector<1x128xf32> to vector<32x128xf32>
    %72 = arith.addf %70, %71 : vector<32x128xf32>
    %cst_44 = arith.constant 0.000000e+00 : f32
    %73 = vector.broadcast %cst_44 : f32 to vector<32x128xf32>
    %74 = arith.maximumf %72, %73 : vector<32x128xf32>
    %75 = arith.truncf %74 : vector<32x128xf32> to vector<32x128xbf16>
    %cst_45 = arith.constant dense<0.000000e+00> : vector<32x128xf32>
    %76 = tpu.matmul %65, %67, %cst_45 {dimension_numbers = #tpu.dot_dimension_numbers<[1], [0], [0], [1], [0, 0, 1, 1], [], []>} : vector<32x128xbf16>, vector<128x128xbf16>, vector<32x128xf32> -> vector<32x128xf32>
    %77 = vector.broadcast %69 : vector<1x128xf32> to vector<32x128xf32>
    %78 = arith.addf %76, %77 : vector<32x128xf32>
    %cst_46 = arith.constant 0.000000e+00 : f32
    %79 = vector.broadcast %cst_46 : f32 to vector<32x128xf32>
    %80 = arith.maximumf %78, %79 : vector<32x128xf32>
    %81 = arith.truncf %80 : vector<32x128xf32> to vector<32x128xbf16>
    %c5 = arith.constant 5 : index
    %c0_47 = arith.constant 0 : index
    %c0_48 = arith.constant 0 : index
    %82 = vector.load %arg2[%c5, %c0_47, %c0_48] : memref<9x128x128xbf16, #tpu.memory_space<vmem>>, vector<1x128x128xbf16>
    %83 = vector.shape_cast %82 : vector<1x128x128xbf16> to vector<128x128xbf16>
    %c5_49 = arith.constant 5 : index
    %c0_50 = arith.constant 0 : index
    %c0_51 = arith.constant 0 : index
    %84 = vector.load %arg3[%c5_49, %c0_50, %c0_51] : memref<9x1x128xf32, #tpu.memory_space<vmem>>, vector<1x1x128xf32>
    %85 = vector.shape_cast %84 : vector<1x1x128xf32> to vector<1x128xf32>
    %cst_52 = arith.constant dense<0.000000e+00> : vector<32x128xf32>
    %86 = tpu.matmul %75, %83, %cst_52 {dimension_numbers = #tpu.dot_dimension_numbers<[1], [0], [0], [1], [0, 0, 1, 1], [], []>} : vector<32x128xbf16>, vector<128x128xbf16>, vector<32x128xf32> -> vector<32x128xf32>
    %87 = vector.broadcast %85 : vector<1x128xf32> to vector<32x128xf32>
    %88 = arith.addf %86, %87 : vector<32x128xf32>
    %cst_53 = arith.constant 0.000000e+00 : f32
    %89 = vector.broadcast %cst_53 : f32 to vector<32x128xf32>
    %90 = arith.maximumf %88, %89 : vector<32x128xf32>
    %91 = arith.truncf %90 : vector<32x128xf32> to vector<32x128xbf16>
    %cst_54 = arith.constant dense<0.000000e+00> : vector<32x128xf32>
    %92 = tpu.matmul %81, %83, %cst_54 {dimension_numbers = #tpu.dot_dimension_numbers<[1], [0], [0], [1], [0, 0, 1, 1], [], []>} : vector<32x128xbf16>, vector<128x128xbf16>, vector<32x128xf32> -> vector<32x128xf32>
    %93 = vector.broadcast %85 : vector<1x128xf32> to vector<32x128xf32>
    %94 = arith.addf %92, %93 : vector<32x128xf32>
    %cst_55 = arith.constant 0.000000e+00 : f32
    %95 = vector.broadcast %cst_55 : f32 to vector<32x128xf32>
    %96 = arith.maximumf %94, %95 : vector<32x128xf32>
    %97 = arith.truncf %96 : vector<32x128xf32> to vector<32x128xbf16>
    %c6 = arith.constant 6 : index
    %c0_56 = arith.constant 0 : index
    %c0_57 = arith.constant 0 : index
    %98 = vector.load %arg2[%c6, %c0_56, %c0_57] : memref<9x128x128xbf16, #tpu.memory_space<vmem>>, vector<1x128x128xbf16>
    %99 = vector.shape_cast %98 : vector<1x128x128xbf16> to vector<128x128xbf16>
    %c6_58 = arith.constant 6 : index
    %c0_59 = arith.constant 0 : index
    %c0_60 = arith.constant 0 : index
    %100 = vector.load %arg3[%c6_58, %c0_59, %c0_60] : memref<9x1x128xf32, #tpu.memory_space<vmem>>, vector<1x1x128xf32>
    %101 = vector.shape_cast %100 : vector<1x1x128xf32> to vector<1x128xf32>
    %cst_61 = arith.constant dense<0.000000e+00> : vector<32x128xf32>
    %102 = tpu.matmul %91, %99, %cst_61 {dimension_numbers = #tpu.dot_dimension_numbers<[1], [0], [0], [1], [0, 0, 1, 1], [], []>} : vector<32x128xbf16>, vector<128x128xbf16>, vector<32x128xf32> -> vector<32x128xf32>
    %103 = vector.broadcast %101 : vector<1x128xf32> to vector<32x128xf32>
    %104 = arith.addf %102, %103 : vector<32x128xf32>
    %cst_62 = arith.constant 0.000000e+00 : f32
    %105 = vector.broadcast %cst_62 : f32 to vector<32x128xf32>
    %106 = arith.maximumf %104, %105 : vector<32x128xf32>
    %107 = arith.truncf %106 : vector<32x128xf32> to vector<32x128xbf16>
    %cst_63 = arith.constant dense<0.000000e+00> : vector<32x128xf32>
    %108 = tpu.matmul %97, %99, %cst_63 {dimension_numbers = #tpu.dot_dimension_numbers<[1], [0], [0], [1], [0, 0, 1, 1], [], []>} : vector<32x128xbf16>, vector<128x128xbf16>, vector<32x128xf32> -> vector<32x128xf32>
    %109 = vector.broadcast %101 : vector<1x128xf32> to vector<32x128xf32>
    %110 = arith.addf %108, %109 : vector<32x128xf32>
    %cst_64 = arith.constant 0.000000e+00 : f32
    %111 = vector.broadcast %cst_64 : f32 to vector<32x128xf32>
    %112 = arith.maximumf %110, %111 : vector<32x128xf32>
    %113 = arith.truncf %112 : vector<32x128xf32> to vector<32x128xbf16>
    %c7 = arith.constant 7 : index
    %c0_65 = arith.constant 0 : index
    %c0_66 = arith.constant 0 : index
    %114 = vector.load %arg2[%c7, %c0_65, %c0_66] : memref<9x128x128xbf16, #tpu.memory_space<vmem>>, vector<1x128x128xbf16>
    %115 = vector.shape_cast %114 : vector<1x128x128xbf16> to vector<128x128xbf16>
    %c7_67 = arith.constant 7 : index
    %c0_68 = arith.constant 0 : index
    %c0_69 = arith.constant 0 : index
    %116 = vector.load %arg3[%c7_67, %c0_68, %c0_69] : memref<9x1x128xf32, #tpu.memory_space<vmem>>, vector<1x1x128xf32>
    %117 = vector.shape_cast %116 : vector<1x1x128xf32> to vector<1x128xf32>
    %cst_70 = arith.constant dense<0.000000e+00> : vector<32x128xf32>
    %118 = tpu.matmul %107, %115, %cst_70 {dimension_numbers = #tpu.dot_dimension_numbers<[1], [0], [0], [1], [0, 0, 1, 1], [], []>} : vector<32x128xbf16>, vector<128x128xbf16>, vector<32x128xf32> -> vector<32x128xf32>
    %119 = vector.broadcast %117 : vector<1x128xf32> to vector<32x128xf32>
    %120 = arith.addf %118, %119 : vector<32x128xf32>
    %cst_71 = arith.constant 0.000000e+00 : f32
    %121 = vector.broadcast %cst_71 : f32 to vector<32x128xf32>
    %122 = arith.maximumf %120, %121 : vector<32x128xf32>
    %123 = arith.truncf %122 : vector<32x128xf32> to vector<32x128xbf16>
    %cst_72 = arith.constant dense<0.000000e+00> : vector<32x128xf32>
    %124 = tpu.matmul %113, %115, %cst_72 {dimension_numbers = #tpu.dot_dimension_numbers<[1], [0], [0], [1], [0, 0, 1, 1], [], []>} : vector<32x128xbf16>, vector<128x128xbf16>, vector<32x128xf32> -> vector<32x128xf32>
    %125 = vector.broadcast %117 : vector<1x128xf32> to vector<32x128xf32>
    %126 = arith.addf %124, %125 : vector<32x128xf32>
    %cst_73 = arith.constant 0.000000e+00 : f32
    %127 = vector.broadcast %cst_73 : f32 to vector<32x128xf32>
    %128 = arith.maximumf %126, %127 : vector<32x128xf32>
    %129 = arith.truncf %128 : vector<32x128xf32> to vector<32x128xbf16>
    %c8 = arith.constant 8 : index
    %c0_74 = arith.constant 0 : index
    %c0_75 = arith.constant 0 : index
    %130 = vector.load %arg2[%c8, %c0_74, %c0_75] : memref<9x128x128xbf16, #tpu.memory_space<vmem>>, vector<1x128x128xbf16>
    %131 = vector.shape_cast %130 : vector<1x128x128xbf16> to vector<128x128xbf16>
    %c8_76 = arith.constant 8 : index
    %c0_77 = arith.constant 0 : index
    %c0_78 = arith.constant 0 : index
    %132 = vector.load %arg3[%c8_76, %c0_77, %c0_78] : memref<9x1x128xf32, #tpu.memory_space<vmem>>, vector<1x1x128xf32>
    %133 = vector.shape_cast %132 : vector<1x1x128xf32> to vector<1x128xf32>
    %cst_79 = arith.constant dense<0.000000e+00> : vector<32x128xf32>
    %134 = tpu.matmul %123, %131, %cst_79 {dimension_numbers = #tpu.dot_dimension_numbers<[1], [0], [0], [1], [0, 0, 1, 1], [], []>} : vector<32x128xbf16>, vector<128x128xbf16>, vector<32x128xf32> -> vector<32x128xf32>
    %135 = vector.broadcast %133 : vector<1x128xf32> to vector<32x128xf32>
    %136 = arith.addf %134, %135 : vector<32x128xf32>
    %137 = arith.truncf %136 : vector<32x128xf32> to vector<32x128xbf16>
    %cst_80 = arith.constant dense<0.000000e+00> : vector<32x128xf32>
    %138 = tpu.matmul %129, %131, %cst_80 {dimension_numbers = #tpu.dot_dimension_numbers<[1], [0], [0], [1], [0, 0, 1, 1], [], []>} : vector<32x128xbf16>, vector<128x128xbf16>, vector<32x128xf32> -> vector<32x128xf32>
    %139 = vector.broadcast %133 : vector<1x128xf32> to vector<32x128xf32>
    %140 = arith.addf %138, %139 : vector<32x128xf32>
    %141 = arith.truncf %140 : vector<32x128xf32> to vector<32x128xbf16>
    %c0_81 = arith.constant 0 : index
    %c0_82 = arith.constant 0 : index
    %142 = vector.load %arg4[%c0_81, %c0_82] : memref<64x128xbf16, #tpu.memory_space<vmem>>, vector<32x128xbf16>
    tpu.vector_store %arg4[%c0_81, %c0_82], %137 {strides = array<i32>} : memref<64x128xbf16, #tpu.memory_space<vmem>>, vector<32x128xbf16>,
    %c32_83 = arith.constant 32 : index
    %c0_84 = arith.constant 0 : index
    %143 = vector.load %arg4[%c32_83, %c0_84] : memref<64x128xbf16, #tpu.memory_space<vmem>>, vector<32x128xbf16>
    tpu.vector_store %arg4[%c32_83, %c0_84], %141 {strides = array<i32>} : memref<64x128xbf16, #tpu.memory_space<vmem>>, vector<32x128xbf16>,
    return
  }
  func.func @transform_0(%arg0: i32) -> (i32, i32) {
    %c0_i32 = arith.constant 0 : i32
    %c0_i32_0 = arith.constant 0 : i32
    return %arg0, %c0_i32 : i32, i32
  }
  func.func @transform_1(%arg0: i32) -> (i32, i32, i32) {
    %c0_i32 = arith.constant 0 : i32
    %c0_i32_0 = arith.constant 0 : i32
    %c0_i32_1 = arith.constant 0 : i32
    %c0_i32_2 = arith.constant 0 : i32
    return %c0_i32, %c0_i32_0, %c0_i32_1 : i32, i32, i32
  }
  func.func @transform_2(%arg0: i32) -> (i32, i32, i32) {
    %c0_i32 = arith.constant 0 : i32
    %c0_i32_0 = arith.constant 0 : i32
    %c0_i32_1 = arith.constant 0 : i32
    %c0_i32_2 = arith.constant 0 : i32
    return %c0_i32, %c0_i32_0, %c0_i32_1 : i32, i32, i32
  }
  func.func @transform_3(%arg0: i32) -> (i32, i32) {
    %c0_i32 = arith.constant 0 : i32
    %c0_i32_0 = arith.constant 0 : i32
    return %arg0, %c0_i32 : i32, i32
  }
}

</mosaic_0001>

<bundles_post_ra>
// kernel: net_forward.1
= control target key start
LH: loop header
LB: loop body
LE: loop exit
PB: predicated region body
PF: predicated region fallthrough
CT: control target
= control target key end

     0   :  { %8 = vsyncpa [#allocation3], 0  ;;  %s2514_s12 = smov [#allocation2]   ;;  %s2600_s0 = inlined_call_operand.vmem [shape: bf16[64,128], index: 0, kind: input, shape index: {}]   ;;  %s2601_s1 = inlined_call_operand.hbm [shape: bf16[9,128,128], index: 1, kind: input, shape index: {}]   ;;  %s2602_s2 = inlined_call_operand.vmem [shape: f32[9,1,128], index: 2, kind: input, shape index: {}]   ;;  %s2603_s3 = inlined_call_operand.vmem [shape: bf16[64,128], index: 3, kind: output, shape index: {}]  }
   0x1   :  { %s16_s13 = sshll.u32 %s2514_s12, 4  ;;  %s2490_s16 = scalar_lea.hbm %s2601_s1, 9216  ;;  %s17_s13 = int_to_ptr.vmem [resolvable:$true] %s16_s13 }
   0x2   :  { %p2491_p0 = scmp.ne.s32.totalorder %s2601_s1, %s2490_s16  ;;  %p2494_p1 = scmp.lt.u32.totalorder %s2490_s16, %s2601_s1 }
   0x4   :  { %p2496_p2 = pnand %p2494_p1, %p2491_p0 }
   0x6   :  { %2499 = shalt.err (!%p2496_p2)
}
   0x7   :  { %s2500_s21 = scalar_lea.vmem %s17_s13, 9216  ;;  %p2505_p4 = scmp.lt.s32.totalorder %s17_s13, %s17_s13 }
   0x8   :  { %p2501_p3 = scmp.ne.s32.totalorder %s17_s13, %s2500_s21  ;;  %p2506_p5 = scmp.lt.s32.totalorder %s2500_s21, %s2500_s21 }
   0xa   :  { %p2507_p6 = por %p2506_p5, %p2505_p4 }
   0xc   :  { %p2508_p7 = pnand %p2507_p6, %p2501_p3 }
   0xe   :  { %2511 = shalt.err (!%p2508_p7)
}
   0xf   :  { %s2515_s22 = smov 64   ;;  %s2516_s23 = smov 4  }
  0x10   :  { %22 = dma.hbm_to_vmem [thread:$0]  %s2601_s1, 9216, %s17_s13, [#allocation3], %s2515_s22, %s2515_s22, %s2516_s23  }
  0x11   :  { %2512 = dma.done.wait [#allocation3], 9216  }
  0x12   :  { %2513 = vsyncadd [#allocation3], 4294958080  ;;  %v2414_v0 = vld [vmem:[#allocation2] sm:$0xff]   ;;  %v2415_v1 = vld [vmem:[#allocation2 + $0x8] sm:$0xff]  }
  0x13   :  { %2051 = vmatprep.subr.bf16.mxu0 %v2414_v0  ;;  %2071 = vmatprep.subr.bf16.mxu1 %v2414_v0  ;;  %v2416_v2 = vld [vmem:[#allocation2 + $0x10] sm:$0xff]   ;;  %v2417_v3 = vld [vmem:[#allocation2 + $0x18] sm:$0xff]   ;;  %v2422_v4 = vld [vmem:[%s2600_s0] sm:$0xff]  }
  0x14   :  { %2052 = vmatpush3.bf16.msra.mxu0 %v2414_v0  ;;  %2072 = vmatpush3.bf16.msra.mxu1 %v2414_v0  ;;  %v2423_v5 = vld [vmem:[%s2600_s0 + $0x10] sm:$0xff]   ;;  %v2418_v6 = vld [vmem:[#allocation2 + $0x20] sm:$0xff]   ;;  %v2419_v7 = vld [vmem:[#allocation2 + $0x28] sm:$0xff]  }
  0x15   :  { %2053 = vmatprep.subr.bf16.mxu0 %v2415_v1  ;;  %2073 = vmatprep.subr.bf16.mxu1 %v2415_v1  ;;  %v2420_v8 = vld [vmem:[#allocation2 + $0x30] sm:$0xff]   ;;  %v2421_v9 = vld [vmem:[#allocation2 + $0x38] sm:$0xff]   ;;  %v2426_v10 = vld [vmem:[#allocation2 + $0x40] sm:$0xff]  }
  0x16   :  { %2067 = vmatprep.mubr.bf16.mxu0 %v2422_v4  ;;  %2087 = vmatprep.mubr.bf16.mxu1 %v2423_v5  ;;  %v2424_v11 = vld [vmem:[%s2600_s0 + $0x8] sm:$0xff]   ;;  %v2425_v12 = vld [vmem:[%s2600_s0 + $0x18] sm:$0xff]   ;;  %v2428_v14 = vld [vmem:[#allocation2 + $0x50] sm:$0xff]  }
  0x17   :  { %v2427_v13 = vld [vmem:[#allocation2 + $0x48] sm:$0xff]   ;;  %v2429_v15 = vld [vmem:[#allocation2 + $0x58] sm:$0xff]   ;;  %v2430_v16 = vld [vmem:[#allocation2 + $0x60] sm:$0xff]  }
  0x18   :  { %2054 = vmatpush3.bf16.msra.mxu0 %v2415_v1  ;;  %2074 = vmatpush3.bf16.msra.mxu1 %v2415_v1  ;;  %v2431_v17 = vld [vmem:[#allocation2 + $0x68] sm:$0xff]   ;;  %v2432_v18 = vld [vmem:[#allocation2 + $0x70] sm:$0xff]   ;;  %v2433_v19 = vld [vmem:[#allocation2 + $0x78] sm:$0xff]  }
  0x19   :  { %2055 = vmatprep.subr.bf16.mxu0 %v2416_v2  ;;  %2075 = vmatprep.subr.bf16.mxu1 %v2416_v2  ;;  %v2434_v20 = vld [vmem:[#allocation2 + $0x80] sm:$0xff]   ;;  %v2435_v50 = vld [vmem:[#allocation2 + $0x88] sm:$0xff]   ;;  %v2436_v51 = vld [vmem:[#allocation2 + $0x90] sm:$0xff]  }
  0x1a   :  { %v1739_v21 = vld [vmem:[%s2602_s2] ss:$0 sm:$0xff]  ;;  %v2437_v52 = vld [vmem:[#allocation2 + $0x98] sm:$0xff]   ;;  %v2439_v54 = vld [vmem:[#allocation2 + $0xa8] sm:$0xff]  }
  0x1b   :  { %v2438_v53 = vld [vmem:[#allocation2 + $0xa0] sm:$0xff]   ;;  %v2440_v55 = vld [vmem:[#allocation2 + $0xb0] sm:$0xff]   ;;  %v2441_v56 = vld [vmem:[#allocation2 + $0xb8] sm:$0xff]  }
  0x1c   :  { %2056 = vmatpush3.bf16.msra.mxu0 %v2416_v2  ;;  %2076 = vmatpush3.bf16.msra.mxu1 %v2416_v2  ;;  %v2442_v57 = vld [vmem:[#allocation2 + $0xc0] sm:$0xff]  }
  0x1d   :  { %2057 = vmatprep.subr.bf16.mxu0 %v2417_v3  ;;  %2077 = vmatprep.subr.bf16.mxu1 %v2417_v3  ;;  %v1753_v58 = vld [vmem:[%s2602_s2 + $0x1] ss:$0 sm:$0xff] }
  0x20   :  { %2058 = vmatpush3.bf16.msra.mxu0 %v2417_v3  ;;  %2078 = vmatpush3.bf16.msra.mxu1 %v2417_v3 }
  0x21   :  { %2059 = vmatprep.subr.bf16.mxu0 %v2418_v6  ;;  %2079 = vmatprep.subr.bf16.mxu1 %v2418_v6 }
  0x24   :  { %2060 = vmatpush3.bf16.msra.mxu0 %v2418_v6  ;;  %2080 = vmatpush3.bf16.msra.mxu1 %v2418_v6 }
  0x25   :  { %2061 = vmatprep.subr.bf16.mxu0 %v2419_v7  ;;  %2081 = vmatprep.subr.bf16.mxu1 %v2419_v7 }
  0x28   :  { %2062 = vmatpush3.bf16.msra.mxu0 %v2419_v7  ;;  %2082 = vmatpush3.bf16.msra.mxu1 %v2419_v7 }
  0x29   :  { %2063 = vmatprep.subr.bf16.mxu0 %v2420_v8  ;;  %2083 = vmatprep.subr.bf16.mxu1 %v2420_v8 }
  0x2c   :  { %2064 = vmatpush3.bf16.msra.mxu0 %v2420_v8  ;;  %2084 = vmatpush3.bf16.msra.mxu1 %v2420_v8 }
  0x2d   :  { %2065 = vmatprep.subr.bf16.mxu0 %v2421_v9  ;;  %2085 = vmatprep.subr.bf16.mxu1 %v2421_v9 }
  0x30   :  { %2066 = vmatpush3.bf16.msra.mxu0 %v2421_v9  ;;  %2086 = vmatpush3.bf16.msra.mxu1 %v2421_v9 }
  0x31   :  { %2091 = vmatprep.subr.bf16.mxu0 %v2426_v10  ;;  %2111 = vmatprep.subr.bf16.mxu1 %v2426_v10 }
  0x33   :  { %2068 = vmatmul.mubr.bf16.vlgmr.msra.gmra.mrb[0].mxu0 %v2424_v11  ;;  %2088 = vmatmul.mubr.bf16.vlgmr.msra.gmra.mrb[0].mxu1 %v2425_v12 }
  0x34   :  { %2092 = vmatpush3.bf16.msra.mxu0 %v2426_v10  ;;  %2112 = vmatpush3.bf16.msra.mxu1 %v2426_v10 }
  0x35   :  { %2093 = vmatprep.subr.bf16.mxu0 %v2427_v13  ;;  %2113 = vmatprep.subr.bf16.mxu1 %v2427_v13 }
  0x38   :  { %2094 = vmatpush3.bf16.msra.mxu0 %v2427_v13  ;;  %2114 = vmatpush3.bf16.msra.mxu1 %v2427_v13 }
  0x39   :  { %2095 = vmatprep.subr.bf16.mxu0 %v2428_v14  ;;  %2115 = vmatprep.subr.bf16.mxu1 %v2428_v14 }
  0x3c   :  { %2096 = vmatpush3.bf16.msra.mxu0 %v2428_v14  ;;  %2116 = vmatpush3.bf16.msra.mxu1 %v2428_v14 }
  0x3d   :  { %2097 = vmatprep.subr.bf16.mxu0 %v2429_v15  ;;  %2117 = vmatprep.subr.bf16.mxu1 %v2429_v15 }
  0x40   :  { %2098 = vmatpush3.bf16.msra.mxu0 %v2429_v15  ;;  %2118 = vmatpush3.bf16.msra.mxu1 %v2429_v15 }
  0x41   :  { %2099 = vmatprep.subr.bf16.mxu0 %v2430_v16  ;;  %2119 = vmatprep.subr.bf16.mxu1 %v2430_v16 }
  0x44   :  { %2100 = vmatpush3.bf16.msra.mxu0 %v2430_v16  ;;  %2120 = vmatpush3.bf16.msra.mxu1 %v2430_v16 }
  0x45   :  { %2101 = vmatprep.subr.bf16.mxu0 %v2431_v17  ;;  %2121 = vmatprep.subr.bf16.mxu1 %v2431_v17 }
  0x48   :  { %2102 = vmatpush3.bf16.msra.mxu0 %v2431_v17  ;;  %2122 = vmatpush3.bf16.msra.mxu1 %v2431_v17 }
  0x49   :  { %2103 = vmatprep.subr.bf16.mxu0 %v2432_v18  ;;  %2123 = vmatprep.subr.bf16.mxu1 %v2432_v18 }
  0x4c   :  { %2104 = vmatpush3.bf16.msra.mxu0 %v2432_v18  ;;  %2124 = vmatpush3.bf16.msra.mxu1 %v2432_v18 }
  0x4d   :  { %2105 = vmatprep.subr.bf16.mxu0 %v2433_v19  ;;  %2125 = vmatprep.subr.bf16.mxu1 %v2433_v19 }
  0x50   :  { %2106 = vmatpush3.bf16.msra.mxu0 %v2433_v19  ;;  %2126 = vmatpush3.bf16.msra.mxu1 %v2433_v19 }
  0x51   :  { %2131 = vmatprep.subr.bf16.mxu0 %v2434_v20  ;;  %2151 = vmatprep.subr.bf16.mxu1 %v2434_v20 }
 0x106   :  { %v2069_v22 = vpop.f32.mrb[0].mxu0  ;;  %v2089_v23 = vpop.f32.mrb[0].mxu1 }
 0x107   :  { %v163_v24 = vadd.f32 %v2069_v22, %v1739_v21  ;;  %v230_v25 = vadd.f32 %v2089_v23, %v1739_v21  ;;  %v154_v26 = vpop.f32.mrb[1].mxu0  ;;  %v221_v27 = vpop.f32.mrb[1].mxu1  ;;  %v2443_v23 = vld [vmem:[#allocation2 + $0xc8] sm:$0xff]  }
 0x108   :  { %v155_v28 = vadd.f32 %v1739_v21, %v154_v26  ;;  %v222_v29 = vadd.f32 %v1739_v21, %v221_v27  ;;  %v2070_v30 = vpop.f32.mrb[2].mxu0  ;;  %v2090_v31 = vpop.f32.mrb[2].mxu1  ;;  %v2446_v26 = vld [vmem:[#allocation2 + $0xe0] sm:$0xff]   ;;  %v2447_v27 = vld [vmem:[#allocation2 + $0xe8] sm:$0xff]  }
 0x109   :  { %v166_v32 = vadd.f32 %v2070_v30, %v1739_v21  ;;  %v233_v33 = vadd.f32 %v2090_v31, %v1739_v21  ;;  %v157_v34 = vpop.f32.mrb[3].mxu0  ;;  %v224_v35 = vpop.f32.mrb[3].mxu1  ;;  %v171_v38 = vmax.f32 %v163_v24, 0.0  ;;  %v238_v39 = vmax.f32 %v230_v25, 0.0  ;;  %v2444_v24 = vld [vmem:[#allocation2 + $0xd0] sm:$0xff]   ;;  %v2445_v25 = vld [vmem:[#allocation2 + $0xd8] sm:$0xff]  }
 0x10a   :  { %v158_v36 = vadd.f32 %v1739_v21, %v157_v34  ;;  %v225_v37 = vadd.f32 %v1739_v21, %v224_v35  ;;  %v169_v42 = vmax.f32 %v155_v28, 0.0  ;;  %v236_v43 = vmax.f32 %v222_v29, 0.0  ;;  %v2448_v28 = vld [vmem:[#allocation2 + $0xf0] sm:$0xff]   ;;  %v2449_v29 = vld [vmem:[#allocation2 + $0xf8] sm:$0xff]   ;;  %v2450_v30 = vld [vmem:[#allocation2 + $0x100] sm:$0xff]  }
 0x10b   :  { %v172_v40 = vmax.f32 %v166_v32, 0.0  ;;  %v239_v41 = vmax.f32 %v233_v33, 0.0  ;;  %v1763_v31 = vld [vmem:[%s2602_s2 + $0x2] ss:$0 sm:$0xff] }
 0x10c   :  { %v170_v44 = vmax.f32 %v158_v36, 0.0  ;;  %v237_v45 = vmax.f32 %v225_v37, 0.0 }
 0x10d   :  { %v174_v46 = vpack.c.bf16 %v172_v40, %v171_v38  ;;  %v241_v47 = vpack.c.bf16 %v239_v41, %v238_v39 }
 0x10e   :  { %v173_v48 = vpack.c.bf16 %v170_v44, %v169_v42  ;;  %v240_v49 = vpack.c.bf16 %v237_v45, %v236_v43 }
 0x110   :  { %2107 = vmatprep.mubr.bf16.mxu0 %v173_v48  ;;  %2127 = vmatprep.mubr.bf16.mxu1 %v240_v49 }
 0x111   :  { %2108 = vmatmul.mubr.bf16.vlgmr.msra.gmra.mrb[4].mxu0 %v174_v46  ;;  %2128 = vmatmul.mubr.bf16.vlgmr.msra.gmra.mrb[4].mxu1 %v241_v47 }
 0x112   :  { %2132 = vmatpush3.bf16.msra.mxu0 %v2434_v20  ;;  %2152 = vmatpush3.bf16.msra.mxu1 %v2434_v20 }
 0x113   :  { %2133 = vmatprep.subr.bf16.mxu0 %v2435_v50  ;;  %2153 = vmatprep.subr.bf16.mxu1 %v2435_v50 }
 0x116   :  { %2134 = vmatpush3.bf16.msra.mxu0 %v2435_v50  ;;  %2154 = vmatpush3.bf16.msra.mxu1 %v2435_v50 }
 0x117   :  { %2135 = vmatprep.subr.bf16.mxu0 %v2436_v51  ;;  %2155 = vmatprep.subr.bf16.mxu1 %v2436_v51 }
 0x11a   :  { %2136 = vmatpush3.bf16.msra.mxu0 %v2436_v51  ;;  %2156 = vmatpush3.bf16.msra.mxu1 %v2436_v51 }
 0x11b   :  { %2137 = vmatprep.subr.bf16.mxu0 %v2437_v52  ;;  %2157 = vmatprep.subr.bf16.mxu1 %v2437_v52 }
 0x11e   :  { %2138 = vmatpush3.bf16.msra.mxu0 %v2437_v52  ;;  %2158 = vmatpush3.bf16.msra.mxu1 %v2437_v52 }
 0x11f   :  { %2139 = vmatprep.subr.bf16.mxu0 %v2438_v53  ;;  %2159 = vmatprep.subr.bf16.mxu1 %v2438_v53 }
 0x122   :  { %2140 = vmatpush3.bf16.msra.mxu0 %v2438_v53  ;;  %2160 = vmatpush3.bf16.msra.mxu1 %v2438_v53 }
 0x123   :  { %2141 = vmatprep.subr.bf16.mxu0 %v2439_v54  ;;  %2161 = vmatprep.subr.bf16.mxu1 %v2439_v54 }
 0x126   :  { %2142 = vmatpush3.bf16.msra.mxu0 %v2439_v54  ;;  %2162 = vmatpush3.bf16.msra.mxu1 %v2439_v54 }
 0x127   :  { %2143 = vmatprep.subr.bf16.mxu0 %v2440_v55  ;;  %2163 = vmatprep.subr.bf16.mxu1 %v2440_v55 }
 0x12a   :  { %2144 = vmatpush3.bf16.msra.mxu0 %v2440_v55  ;;  %2164 = vmatpush3.bf16.msra.mxu1 %v2440_v55 }
 0x12b   :  { %2145 = vmatprep.subr.bf16.mxu0 %v2441_v56  ;;  %2165 = vmatprep.subr.bf16.mxu1 %v2441_v56 }
 0x12e   :  { %2146 = vmatpush3.bf16.msra.mxu0 %v2441_v56  ;;  %2166 = vmatpush3.bf16.msra.mxu1 %v2441_v56 }
 0x12f   :  { %2171 = vmatprep.subr.bf16.mxu0 %v2442_v57  ;;  %2191 = vmatprep.subr.bf16.mxu1 %v2442_v57 }
 0x1e4   :  { %v2109_v59 = vpop.f32.mrb[4].mxu0  ;;  %v2129_v60 = vpop.f32.mrb[4].mxu1 }
 0x1e5   :  { %v358_v61 = vadd.f32 %v2109_v59, %v1753_v58  ;;  %v413_v62 = vadd.f32 %v2129_v60, %v1753_v58  ;;  %v349_v63 = vpop.f32.mrb[5].mxu0  ;;  %v404_v0 = vpop.f32.mrb[5].mxu1  ;;  %v2451_v60 = vld [vmem:[#allocation2 + $0x108] sm:$0xff]  }
 0x1e6   :  { %v350_v1 = vadd.f32 %v1753_v58, %v349_v63  ;;  %v405_v2 = vadd.f32 %v1753_v58, %v404_v0  ;;  %v2110_v3 = vpop.f32.mrb[6].mxu0  ;;  %v2130_v4 = vpop.f32.mrb[6].mxu1  ;;  %v2454_v63 = vld [vmem:[#allocation2 + $0x120] sm:$0xff]   ;;  %v2455_v0 = vld [vmem:[#allocation2 + $0x128] sm:$0xff]  }
 0x1e7   :  { %v361_v5 = vadd.f32 %v2110_v3, %v1753_v58  ;;  %v416_v6 = vadd.f32 %v2130_v4, %v1753_v58  ;;  %v352_v7 = vpop.f32.mrb[7].mxu0  ;;  %v407_v8 = vpop.f32.mrb[7].mxu1  ;;  %v366_v11 = vmax.f32 %v358_v61, 0.0  ;;  %v421_v12 = vmax.f32 %v413_v62, 0.0  ;;  %v2452_v61 = vld [vmem:[#allocation2 + $0x110] sm:$0xff]   ;;  %v2453_v62 = vld [vmem:[#allocation2 + $0x118] sm:$0xff]  }
 0x1e8   :  { %v353_v9 = vadd.f32 %v1753_v58, %v352_v7  ;;  %v408_v10 = vadd.f32 %v1753_v58, %v407_v8  ;;  %v364_v15 = vmax.f32 %v350_v1, 0.0  ;;  %v419_v16 = vmax.f32 %v405_v2, 0.0  ;;  %v2456_v1 = vld [vmem:[#allocation2 + $0x130] sm:$0xff]   ;;  %v2457_v2 = vld [vmem:[#allocation2 + $0x138] sm:$0xff]   ;;  %v2458_v3 = vld [vmem:[#allocation2 + $0x140] sm:$0xff]  }
 0x1e9   :  { %v367_v13 = vmax.f32 %v361_v5, 0.0  ;;  %v422_v14 = vmax.f32 %v416_v6, 0.0  ;;  %v1773_v4 = vld [vmem:[%s2602_s2 + $0x3] ss:$0 sm:$0xff] }
 0x1ea   :  { %v365_v17 = vmax.f32 %v353_v9, 0.0  ;;  %v420_v18 = vmax.f32 %v408_v10, 0.0 }
 0x1eb   :  { %v369_v19 = vpack.c.bf16 %v367_v13, %v366_v11  ;;  %v424_v20 = vpack.c.bf16 %v422_v14, %v421_v12 }
 0x1ec   :  { %v368_v21 = vpack.c.bf16 %v365_v17, %v364_v15  ;;  %v423_v22 = vpack.c.bf16 %v420_v18, %v419_v16 }
 0x1ee   :  { %2147 = vmatprep.mubr.bf16.mxu0 %v368_v21  ;;  %2167 = vmatprep.mubr.bf16.mxu1 %v423_v22 }
 0x1ef   :  { %2148 = vmatmul.mubr.bf16.vlgmr.msra.gmra.mrb[8].mxu0 %v369_v19  ;;  %2168 = vmatmul.mubr.bf16.vlgmr.msra.gmra.mrb[8].mxu1 %v424_v20 }
 0x1f0   :  { %2172 = vmatpush3.bf16.msra.mxu0 %v2442_v57  ;;  %2192 = vmatpush3.bf16.msra.mxu1 %v2442_v57 }
 0x1f1   :  { %2173 = vmatprep.subr.bf16.mxu0 %v2443_v23  ;;  %2193 = vmatprep.subr.bf16.mxu1 %v2443_v23 }
 0x1f4   :  { %2174 = vmatpush3.bf16.msra.mxu0 %v2443_v23  ;;  %2194 = vmatpush3.bf16.msra.mxu1 %v2443_v23 }
 0x1f5   :  { %2175 = vmatprep.subr.bf16.mxu0 %v2444_v24  ;;  %2195 = vmatprep.subr.bf16.mxu1 %v2444_v24 }
 0x1f8   :  { %2176 = vmatpush3.bf16.msra.mxu0 %v2444_v24  ;;  %2196 = vmatpush3.bf16.msra.mxu1 %v2444_v24 }
 0x1f9   :  { %2177 = vmatprep.subr.bf16.mxu0 %v2445_v25  ;;  %2197 = vmatprep.subr.bf16.mxu1 %v2445_v25 }
 0x1fc   :  { %2178 = vmatpush3.bf16.msra.mxu0 %v2445_v25  ;;  %2198 = vmatpush3.bf16.msra.mxu1 %v2445_v25 }
 0x1fd   :  { %2179 = vmatprep.subr.bf16.mxu0 %v2446_v26  ;;  %2199 = vmatprep.subr.bf16.mxu1 %v2446_v26 }
 0x200   :  { %2180 = vmatpush3.bf16.msra.mxu0 %v2446_v26  ;;  %2200 = vmatpush3.bf16.msra.mxu1 %v2446_v26 }
 0x201   :  { %2181 = vmatprep.subr.bf16.mxu0 %v2447_v27  ;;  %2201 = vmatprep.subr.bf16.mxu1 %v2447_v27 }
 0x204   :  { %2182 = vmatpush3.bf16.msra.mxu0 %v2447_v27  ;;  %2202 = vmatpush3.bf16.msra.mxu1 %v2447_v27 }
 0x205   :  { %2183 = vmatprep.subr.bf16.mxu0 %v2448_v28  ;;  %2203 = vmatprep.subr.bf16.mxu1 %v2448_v28 }
 0x208   :  { %2184 = vmatpush3.bf16.msra.mxu0 %v2448_v28  ;;  %2204 = vmatpush3.bf16.msra.mxu1 %v2448_v28 }
 0x209   :  { %2185 = vmatprep.subr.bf16.mxu0 %v2449_v29  ;;  %2205 = vmatprep.subr.bf16.mxu1 %v2449_v29 }
 0x20c   :  { %2186 = vmatpush3.bf16.msra.mxu0 %v2449_v29  ;;  %2206 = vmatpush3.bf16.msra.mxu1 %v2449_v29 }
 0x20d   :  { %2211 = vmatprep.subr.bf16.mxu0 %v2450_v30  ;;  %2231 = vmatprep.subr.bf16.mxu1 %v2450_v30 }
 0x2c2   :  { %v2149_v32 = vpop.f32.mrb[8].mxu0  ;;  %v2169_v33 = vpop.f32.mrb[8].mxu1 }
 0x2c3   :  { %v541_v34 = vadd.f32 %v2149_v32, %v1763_v31  ;;  %v596_v35 = vadd.f32 %v2169_v33, %v1763_v31  ;;  %v532_v36 = vpop.f32.mrb[9].mxu0  ;;  %v587_v37 = vpop.f32.mrb[9].mxu1  ;;  %v2459_v33 = vld [vmem:[#allocation2 + $0x148] sm:$0xff]  }
 0x2c4   :  { %v533_v38 = vadd.f32 %v1763_v31, %v532_v36  ;;  %v588_v39 = vadd.f32 %v1763_v31, %v587_v37  ;;  %v2150_v40 = vpop.f32.mrb[10].mxu0  ;;  %v2170_v41 = vpop.f32.mrb[10].mxu1  ;;  %v2462_v36 = vld [vmem:[#allocation2 + $0x160] sm:$0xff]   ;;  %v2463_v37 = vld [vmem:[#allocation2 + $0x168] sm:$0xff]  }
 0x2c5   :  { %v544_v42 = vadd.f32 %v2150_v40, %v1763_v31  ;;  %v599_v43 = vadd.f32 %v2170_v41, %v1763_v31  ;;  %v535_v44 = vpop.f32.mrb[11].mxu0  ;;  %v590_v45 = vpop.f32.mrb[11].mxu1  ;;  %v549_v48 = vmax.f32 %v541_v34, 0.0  ;;  %v604_v49 = vmax.f32 %v596_v35, 0.0  ;;  %v2460_v34 = vld [vmem:[#allocation2 + $0x150] sm:$0xff]   ;;  %v2461_v35 = vld [vmem:[#allocation2 + $0x158] sm:$0xff]  }
 0x2c6   :  { %v536_v46 = vadd.f32 %v1763_v31, %v535_v44  ;;  %v591_v47 = vadd.f32 %v1763_v31, %v590_v45  ;;  %v547_v52 = vmax.f32 %v533_v38, 0.0  ;;  %v602_v53 = vmax.f32 %v588_v39, 0.0  ;;  %v2464_v38 = vld [vmem:[#allocation2 + $0x170] sm:$0xff]   ;;  %v2465_v39 = vld [vmem:[#allocation2 + $0x178] sm:$0xff]   ;;  %v2466_v40 = vld [vmem:[#allocation2 + $0x180] sm:$0xff]  }
 0x2c7   :  { %v550_v50 = vmax.f32 %v544_v42, 0.0  ;;  %v605_v51 = vmax.f32 %v599_v43, 0.0  ;;  %v1783_v41 = vld [vmem:[%s2602_s2 + $0x4] ss:$0 sm:$0xff] }
 0x2c8   :  { %v548_v54 = vmax.f32 %v536_v46, 0.0  ;;  %v603_v55 = vmax.f32 %v591_v47, 0.0 }
 0x2c9   :  { %v552_v56 = vpack.c.bf16 %v550_v50, %v549_v48  ;;  %v607_v57 = vpack.c.bf16 %v605_v51, %v604_v49 }
 0x2ca   :  { %v551_v58 = vpack.c.bf16 %v548_v54, %v547_v52  ;;  %v606_v59 = vpack.c.bf16 %v603_v55, %v602_v53 }
 0x2cc   :  { %2187 = vmatprep.mubr.bf16.mxu0 %v551_v58  ;;  %2207 = vmatprep.mubr.bf16.mxu1 %v606_v59 }
 0x2cd   :  { %2188 = vmatmul.mubr.bf16.vlgmr.msra.gmra.mrb[12].mxu0 %v552_v56  ;;  %2208 = vmatmul.mubr.bf16.vlgmr.msra.gmra.mrb[12].mxu1 %v607_v57 }
 0x2ce   :  { %2212 = vmatpush3.bf16.msra.mxu0 %v2450_v30  ;;  %2232 = vmatpush3.bf16.msra.mxu1 %v2450_v30 }
 0x2cf   :  { %2213 = vmatprep.subr.bf16.mxu0 %v2451_v60  ;;  %2233 = vmatprep.subr.bf16.mxu1 %v2451_v60 }
 0x2d2   :  { %2214 = vmatpush3.bf16.msra.mxu0 %v2451_v60  ;;  %2234 = vmatpush3.bf16.msra.mxu1 %v2451_v60 }
 0x2d3   :  { %2215 = vmatprep.subr.bf16.mxu0 %v2452_v61  ;;  %2235 = vmatprep.subr.bf16.mxu1 %v2452_v61 }
 0x2d6   :  { %2216 = vmatpush3.bf16.msra.mxu0 %v2452_v61  ;;  %2236 = vmatpush3.bf16.msra.mxu1 %v2452_v61 }
 0x2d7   :  { %2217 = vmatprep.subr.bf16.mxu0 %v2453_v62  ;;  %2237 = vmatprep.subr.bf16.mxu1 %v2453_v62 }
 0x2da   :  { %2218 = vmatpush3.bf16.msra.mxu0 %v2453_v62  ;;  %2238 = vmatpush3.bf16.msra.mxu1 %v2453_v62 }
 0x2db   :  { %2219 = vmatprep.subr.bf16.mxu0 %v2454_v63  ;;  %2239 = vmatprep.subr.bf16.mxu1 %v2454_v63 }
 0x2de   :  { %2220 = vmatpush3.bf16.msra.mxu0 %v2454_v63  ;;  %2240 = vmatpush3.bf16.msra.mxu1 %v2454_v63 }
 0x2df   :  { %2221 = vmatprep.subr.bf16.mxu0 %v2455_v0  ;;  %2241 = vmatprep.subr.bf16.mxu1 %v2455_v0 }
 0x2e2   :  { %2222 = vmatpush3.bf16.msra.mxu0 %v2455_v0  ;;  %2242 = vmatpush3.bf16.msra.mxu1 %v2455_v0 }
 0x2e3   :  { %2223 = vmatprep.subr.bf16.mxu0 %v2456_v1  ;;  %2243 = vmatprep.subr.bf16.mxu1 %v2456_v1 }
 0x2e6   :  { %2224 = vmatpush3.bf16.msra.mxu0 %v2456_v1  ;;  %2244 = vmatpush3.bf16.msra.mxu1 %v2456_v1 }
 0x2e7   :  { %2225 = vmatprep.subr.bf16.mxu0 %v2457_v2  ;;  %2245 = vmatprep.subr.bf16.mxu1 %v2457_v2 }
 0x2ea   :  { %2226 = vmatpush3.bf16.msra.mxu0 %v2457_v2  ;;  %2246 = vmatpush3.bf16.msra.mxu1 %v2457_v2 }
 0x2eb   :  { %2251 = vmatprep.subr.bf16.mxu0 %v2458_v3  ;;  %2271 = vmatprep.subr.bf16.mxu1 %v2458_v3 }
 0x3a0   :  { %v2189_v5 = vpop.f32.mrb[12].mxu0  ;;  %v2209_v6 = vpop.f32.mrb[12].mxu1 }
 0x3a1   :  { %v724_v7 = vadd.f32 %v2189_v5, %v1773_v4  ;;  %v779_v8 = vadd.f32 %v2209_v6, %v1773_v4  ;;  %v715_v9 = vpop.f32.mrb[13].mxu0  ;;  %v770_v10 = vpop.f32.mrb[13].mxu1  ;;  %v2467_v6 = vld [vmem:[#allocation2 + $0x188] sm:$0xff]  }
 0x3a2   :  { %v716_v11 = vadd.f32 %v1773_v4, %v715_v9  ;;  %v771_v12 = vadd.f32 %v1773_v4, %v770_v10  ;;  %v2190_v13 = vpop.f32.mrb[14].mxu0  ;;  %v2210_v14 = vpop.f32.mrb[14].mxu1  ;;  %v2470_v9 = vld [vmem:[#allocation2 + $0x1a0] sm:$0xff]   ;;  %v2471_v10 = vld [vmem:[#allocation2 + $0x1a8] sm:$0xff]  }
 0x3a3   :  { %v727_v15 = vadd.f32 %v2190_v13, %v1773_v4  ;;  %v782_v16 = vadd.f32 %v2210_v14, %v1773_v4  ;;  %v718_v17 = vpop.f32.mrb[15].mxu0  ;;  %v773_v18 = vpop.f32.mrb[15].mxu1  ;;  %v732_v21 = vmax.f32 %v724_v7, 0.0  ;;  %v787_v22 = vmax.f32 %v779_v8, 0.0  ;;  %v2468_v7 = vld [vmem:[#allocation2 + $0x190] sm:$0xff]   ;;  %v2469_v8 = vld [vmem:[#allocation2 + $0x198] sm:$0xff]  }
 0x3a4   :  { %v719_v19 = vadd.f32 %v1773_v4, %v718_v17  ;;  %v774_v20 = vadd.f32 %v1773_v4, %v773_v18  ;;  %v730_v25 = vmax.f32 %v716_v11, 0.0  ;;  %v785_v26 = vmax.f32 %v771_v12, 0.0  ;;  %v2472_v11 = vld [vmem:[#allocation2 + $0x1b0] sm:$0xff]   ;;  %v2473_v12 = vld [vmem:[#allocation2 + $0x1b8] sm:$0xff]   ;;  %v2474_v13 = vld [vmem:[#allocation2 + $0x1c0] sm:$0xff]  }
 0x3a5   :  { %v733_v23 = vmax.f32 %v727_v15, 0.0  ;;  %v788_v24 = vmax.f32 %v782_v16, 0.0  ;;  %v1793_v14 = vld [vmem:[%s2602_s2 + $0x5] ss:$0 sm:$0xff] }
 0x3a6   :  { %v731_v27 = vmax.f32 %v719_v19, 0.0  ;;  %v786_v28 = vmax.f32 %v774_v20, 0.0 }
 0x3a7   :  { %v735_v29 = vpack.c.bf16 %v733_v23, %v732_v21  ;;  %v790_v30 = vpack.c.bf16 %v788_v24, %v787_v22 }
 0x3a8   :  { %v734_v31 = vpack.c.bf16 %v731_v27, %v730_v25  ;;  %v789_v32 = vpack.c.bf16 %v786_v28, %v785_v26 }
 0x3aa   :  { %2227 = vmatprep.mubr.bf16.mxu0 %v734_v31  ;;  %2247 = vmatprep.mubr.bf16.mxu1 %v789_v32 }
 0x3ab   :  { %2228 = vmatmul.mubr.bf16.vlgmr.msra.gmra.mrb[16].mxu0 %v735_v29  ;;  %2248 = vmatmul.mubr.bf16.vlgmr.msra.gmra.mrb[16].mxu1 %v790_v30 }
 0x3ac   :  { %2252 = vmatpush3.bf16.msra.mxu0 %v2458_v3  ;;  %2272 = vmatpush3.bf16.msra.mxu1 %v2458_v3 }
 0x3ad   :  { %2253 = vmatprep.subr.bf16.mxu0 %v2459_v33  ;;  %2273 = vmatprep.subr.bf16.mxu1 %v2459_v33 }
 0x3b0   :  { %2254 = vmatpush3.bf16.msra.mxu0 %v2459_v33  ;;  %2274 = vmatpush3.bf16.msra.mxu1 %v2459_v33 }
 0x3b1   :  { %2255 = vmatprep.subr.bf16.mxu0 %v2460_v34  ;;  %2275 = vmatprep.subr.bf16.mxu1 %v2460_v34 }
 0x3b4   :  { %2256 = vmatpush3.bf16.msra.mxu0 %v2460_v34  ;;  %2276 = vmatpush3.bf16.msra.mxu1 %v2460_v34 }
 0x3b5   :  { %2257 = vmatprep.subr.bf16.mxu0 %v2461_v35  ;;  %2277 = vmatprep.subr.bf16.mxu1 %v2461_v35 }
 0x3b8   :  { %2258 = vmatpush3.bf16.msra.mxu0 %v2461_v35  ;;  %2278 = vmatpush3.bf16.msra.mxu1 %v2461_v35 }
 0x3b9   :  { %2259 = vmatprep.subr.bf16.mxu0 %v2462_v36  ;;  %2279 = vmatprep.subr.bf16.mxu1 %v2462_v36 }
 0x3bc   :  { %2260 = vmatpush3.bf16.msra.mxu0 %v2462_v36  ;;  %2280 = vmatpush3.bf16.msra.mxu1 %v2462_v36 }
 0x3bd   :  { %2261 = vmatprep.subr.bf16.mxu0 %v2463_v37  ;;  %2281 = vmatprep.subr.bf16.mxu1 %v2463_v37 }
 0x3c0   :  { %2262 = vmatpush3.bf16.msra.mxu0 %v2463_v37  ;;  %2282 = vmatpush3.bf16.msra.mxu1 %v2463_v37 }
 0x3c1   :  { %2263 = vmatprep.subr.bf16.mxu0 %v2464_v38  ;;  %2283 = vmatprep.subr.bf16.mxu1 %v2464_v38 }
 0x3c4   :  { %2264 = vmatpush3.bf16.msra.mxu0 %v2464_v38  ;;  %2284 = vmatpush3.bf16.msra.mxu1 %v2464_v38 }
 0x3c5   :  { %2265 = vmatprep.subr.bf16.mxu0 %v2465_v39  ;;  %2285 = vmatprep.subr.bf16.mxu1 %v2465_v39 }
 0x3c8   :  { %2266 = vmatpush3.bf16.msra.mxu0 %v2465_v39  ;;  %2286 = vmatpush3.bf16.msra.mxu1 %v2465_v39 }
 0x3c9   :  { %2291 = vmatprep.subr.bf16.mxu0 %v2466_v40  ;;  %2311 = vmatprep.subr.bf16.mxu1 %v2466_v40 }
 0x47e   :  { %v2229_v42 = vpop.f32.mrb[16].mxu0  ;;  %v2249_v43 = vpop.f32.mrb[16].mxu1 }
 0x47f   :  { %v907_v44 = vadd.f32 %v2229_v42, %v1783_v41  ;;  %v962_v45 = vadd.f32 %v2249_v43, %v1783_v41  ;;  %v898_v46 = vpop.f32.mrb[17].mxu0  ;;  %v953_v47 = vpop.f32.mrb[17].mxu1  ;;  %v2475_v43 = vld [vmem:[#allocation2 + $0x1c8] sm:$0xff]  }
 0x480   :  { %v899_v48 = vadd.f32 %v1783_v41, %v898_v46  ;;  %v954_v49 = vadd.f32 %v1783_v41, %v953_v47  ;;  %v2230_v50 = vpop.f32.mrb[18].mxu0  ;;  %v2250_v51 = vpop.f32.mrb[18].mxu1  ;;  %v2478_v46 = vld [vmem:[#allocation2 + $0x1e0] sm:$0xff]   ;;  %v2479_v47 = vld [vmem:[#allocation2 + $0x1e8] sm:$0xff]  }
 0x481   :  { %v910_v52 = vadd.f32 %v2230_v50, %v1783_v41  ;;  %v965_v53 = vadd.f32 %v2250_v51, %v1783_v41  ;;  %v901_v54 = vpop.f32.mrb[19].mxu0  ;;  %v956_v55 = vpop.f32.mrb[19].mxu1  ;;  %v915_v58 = vmax.f32 %v907_v44, 0.0  ;;  %v970_v59 = vmax.f32 %v962_v45, 0.0  ;;  %v2476_v44 = vld [vmem:[#allocation2 + $0x1d0] sm:$0xff]   ;;  %v2477_v45 = vld [vmem:[#allocation2 + $0x1d8] sm:$0xff]  }
 0x482   :  { %v902_v56 = vadd.f32 %v1783_v41, %v901_v54  ;;  %v957_v57 = vadd.f32 %v1783_v41, %v956_v55  ;;  %v913_v62 = vmax.f32 %v899_v48, 0.0  ;;  %v968_v63 = vmax.f32 %v954_v49, 0.0  ;;  %v2480_v48 = vld [vmem:[#allocation2 + $0x1f0] sm:$0xff]   ;;  %v2481_v49 = vld [vmem:[#allocation2 + $0x1f8] sm:$0xff]   ;;  %v2482_v50 = vld [vmem:[#allocation2 + $0x200] sm:$0xff]  }
 0x483   :  { %v916_v60 = vmax.f32 %v910_v52, 0.0  ;;  %v971_v61 = vmax.f32 %v965_v53, 0.0  ;;  %v1803_v51 = vld [vmem:[%s2602_s2 + $0x6] ss:$0 sm:$0xff] }
 0x484   :  { %v914_v0 = vmax.f32 %v902_v56, 0.0  ;;  %v969_v1 = vmax.f32 %v957_v57, 0.0 }
 0x485   :  { %v918_v2 = vpack.c.bf16 %v916_v60, %v915_v58  ;;  %v973_v3 = vpack.c.bf16 %v971_v61, %v970_v59 }
 0x486   :  { %v917_v4 = vpack.c.bf16 %v914_v0, %v913_v62  ;;  %v972_v5 = vpack.c.bf16 %v969_v1, %v968_v63 }
 0x488   :  { %2267 = vmatprep.mubr.bf16.mxu0 %v917_v4  ;;  %2287 = vmatprep.mubr.bf16.mxu1 %v972_v5 }
 0x489   :  { %2268 = vmatmul.mubr.bf16.vlgmr.msra.gmra.mrb[20].mxu0 %v918_v2  ;;  %2288 = vmatmul.mubr.bf16.vlgmr.msra.gmra.mrb[20].mxu1 %v973_v3 }
 0x48a   :  { %2292 = vmatpush3.bf16.msra.mxu0 %v2466_v40  ;;  %2312 = vmatpush3.bf16.msra.mxu1 %v2466_v40 }
 0x48b   :  { %2293 = vmatprep.subr.bf16.mxu0 %v2467_v6  ;;  %2313 = vmatprep.subr.bf16.mxu1 %v2467_v6 }
 0x48e   :  { %2294 = vmatpush3.bf16.msra.mxu0 %v2467_v6  ;;  %2314 = vmatpush3.bf16.msra.mxu1 %v2467_v6 }
 0x48f   :  { %2295 = vmatprep.subr.bf16.mxu0 %v2468_v7  ;;  %2315 = vmatprep.subr.bf16.mxu1 %v2468_v7 }
 0x492   :  { %2296 = vmatpush3.bf16.msra.mxu0 %v2468_v7  ;;  %2316 = vmatpush3.bf16.msra.mxu1 %v2468_v7 }
 0x493   :  { %2297 = vmatprep.subr.bf16.mxu0 %v2469_v8  ;;  %2317 = vmatprep.subr.bf16.mxu1 %v2469_v8 }
 0x496   :  { %2298 = vmatpush3.bf16.msra.mxu0 %v2469_v8  ;;  %2318 = vmatpush3.bf16.msra.mxu1 %v2469_v8 }
 0x497   :  { %2299 = vmatprep.subr.bf16.mxu0 %v2470_v9  ;;  %2319 = vmatprep.subr.bf16.mxu1 %v2470_v9 }
 0x49a   :  { %2300 = vmatpush3.bf16.msra.mxu0 %v2470_v9  ;;  %2320 = vmatpush3.bf16.msra.mxu1 %v2470_v9 }
 0x49b   :  { %2301 = vmatprep.subr.bf16.mxu0 %v2471_v10  ;;  %2321 = vmatprep.subr.bf16.mxu1 %v2471_v10 }
 0x49e   :  { %2302 = vmatpush3.bf16.msra.mxu0 %v2471_v10  ;;  %2322 = vmatpush3.bf16.msra.mxu1 %v2471_v10 }
 0x49f   :  { %2303 = vmatprep.subr.bf16.mxu0 %v2472_v11  ;;  %2323 = vmatprep.subr.bf16.mxu1 %v2472_v11 }
 0x4a2   :  { %2304 = vmatpush3.bf16.msra.mxu0 %v2472_v11  ;;  %2324 = vmatpush3.bf16.msra.mxu1 %v2472_v11 }
 0x4a3   :  { %2305 = vmatprep.subr.bf16.mxu0 %v2473_v12  ;;  %2325 = vmatprep.subr.bf16.mxu1 %v2473_v12 }
 0x4a6   :  { %2306 = vmatpush3.bf16.msra.mxu0 %v2473_v12  ;;  %2326 = vmatpush3.bf16.msra.mxu1 %v2473_v12 }
 0x4a7   :  { %2331 = vmatprep.subr.bf16.mxu0 %v2474_v13  ;;  %2351 = vmatprep.subr.bf16.mxu1 %v2474_v13 }
 0x55c   :  { %v2269_v15 = vpop.f32.mrb[20].mxu0  ;;  %v2289_v16 = vpop.f32.mrb[20].mxu1 }
 0x55d   :  { %v1090_v17 = vadd.f32 %v2269_v15, %v1793_v14  ;;  %v1145_v18 = vadd.f32 %v2289_v16, %v1793_v14  ;;  %v1081_v19 = vpop.f32.mrb[21].mxu0  ;;  %v1136_v20 = vpop.f32.mrb[21].mxu1  ;;  %v2483_v16 = vld [vmem:[#allocation2 + $0x208] sm:$0xff]  }
 0x55e   :  { %v1082_v21 = vadd.f32 %v1793_v14, %v1081_v19  ;;  %v1137_v22 = vadd.f32 %v1793_v14, %v1136_v20  ;;  %v2270_v23 = vpop.f32.mrb[22].mxu0  ;;  %v2290_v24 = vpop.f32.mrb[22].mxu1  ;;  %v2486_v19 = vld [vmem:[#allocation2 + $0x220] sm:$0xff]   ;;  %v2487_v20 = vld [vmem:[#allocation2 + $0x228] sm:$0xff]  }
 0x55f   :  { %v1093_v25 = vadd.f32 %v2270_v23, %v1793_v14  ;;  %v1148_v26 = vadd.f32 %v2290_v24, %v1793_v14  ;;  %v1084_v27 = vpop.f32.mrb[23].mxu0  ;;  %v1139_v28 = vpop.f32.mrb[23].mxu1  ;;  %v1098_v31 = vmax.f32 %v1090_v17, 0.0  ;;  %v1153_v32 = vmax.f32 %v1145_v18, 0.0  ;;  %v2484_v17 = vld [vmem:[#allocation2 + $0x210] sm:$0xff]   ;;  %v2485_v18 = vld [vmem:[#allocation2 + $0x218] sm:$0xff]  }
 0x560   :  { %v1085_v29 = vadd.f32 %v1793_v14, %v1084_v27  ;;  %v1140_v30 = vadd.f32 %v1793_v14, %v1139_v28  ;;  %v1096_v35 = vmax.f32 %v1082_v21, 0.0  ;;  %v1151_v36 = vmax.f32 %v1137_v22, 0.0  ;;  %v2488_v21 = vld [vmem:[#allocation2 + $0x230] sm:$0xff]   ;;  %v2489_v22 = vld [vmem:[#allocation2 + $0x238] sm:$0xff]   ;;  %v1813_v23 = vld [vmem:[%s2602_s2 + $0x7] ss:$0 sm:$0xff] }
 0x561   :  { %v1099_v33 = vmax.f32 %v1093_v25, 0.0  ;;  %v1154_v34 = vmax.f32 %v1148_v26, 0.0 }
 0x562   :  { %v1097_v37 = vmax.f32 %v1085_v29, 0.0  ;;  %v1152_v38 = vmax.f32 %v1140_v30, 0.0 }
 0x563   :  { %v1101_v39 = vpack.c.bf16 %v1099_v33, %v1098_v31  ;;  %v1156_v40 = vpack.c.bf16 %v1154_v34, %v1153_v32 }
 0x564   :  { %v1100_v41 = vpack.c.bf16 %v1097_v37, %v1096_v35  ;;  %v1155_v42 = vpack.c.bf16 %v1152_v38, %v1151_v36 }
 0x566   :  { %2307 = vmatprep.mubr.bf16.mxu0 %v1100_v41  ;;  %2327 = vmatprep.mubr.bf16.mxu1 %v1155_v42 }
 0x567   :  { %2308 = vmatmul.mubr.bf16.vlgmr.msra.gmra.mrb[24].mxu0 %v1101_v39  ;;  %2328 = vmatmul.mubr.bf16.vlgmr.msra.gmra.mrb[24].mxu1 %v1156_v40 }
 0x568   :  { %2332 = vmatpush3.bf16.msra.mxu0 %v2474_v13  ;;  %2352 = vmatpush3.bf16.msra.mxu1 %v2474_v13 }
 0x569   :  { %2333 = vmatprep.subr.bf16.mxu0 %v2475_v43  ;;  %2353 = vmatprep.subr.bf16.mxu1 %v2475_v43 }
 0x56c   :  { %2334 = vmatpush3.bf16.msra.mxu0 %v2475_v43  ;;  %2354 = vmatpush3.bf16.msra.mxu1 %v2475_v43 }
 0x56d   :  { %2335 = vmatprep.subr.bf16.mxu0 %v2476_v44  ;;  %2355 = vmatprep.subr.bf16.mxu1 %v2476_v44 }
 0x570   :  { %2336 = vmatpush3.bf16.msra.mxu0 %v2476_v44  ;;  %2356 = vmatpush3.bf16.msra.mxu1 %v2476_v44 }
 0x571   :  { %2337 = vmatprep.subr.bf16.mxu0 %v2477_v45  ;;  %2357 = vmatprep.subr.bf16.mxu1 %v2477_v45 }
 0x574   :  { %2338 = vmatpush3.bf16.msra.mxu0 %v2477_v45  ;;  %2358 = vmatpush3.bf16.msra.mxu1 %v2477_v45 }
 0x575   :  { %2339 = vmatprep.subr.bf16.mxu0 %v2478_v46  ;;  %2359 = vmatprep.subr.bf16.mxu1 %v2478_v46 }
 0x578   :  { %2340 = vmatpush3.bf16.msra.mxu0 %v2478_v46  ;;  %2360 = vmatpush3.bf16.msra.mxu1 %v2478_v46 }
 0x579   :  { %2341 = vmatprep.subr.bf16.mxu0 %v2479_v47  ;;  %2361 = vmatprep.subr.bf16.mxu1 %v2479_v47 }
 0x57c   :  { %2342 = vmatpush3.bf16.msra.mxu0 %v2479_v47  ;;  %2362 = vmatpush3.bf16.msra.mxu1 %v2479_v47 }
 0x57d   :  { %2343 = vmatprep.subr.bf16.mxu0 %v2480_v48  ;;  %2363 = vmatprep.subr.bf16.mxu1 %v2480_v48 }
 0x580   :  { %2344 = vmatpush3.bf16.msra.mxu0 %v2480_v48  ;;  %2364 = vmatpush3.bf16.msra.mxu1 %v2480_v48 }
 0x581   :  { %2345 = vmatprep.subr.bf16.mxu0 %v2481_v49  ;;  %2365 = vmatprep.subr.bf16.mxu1 %v2481_v49 }
 0x584   :  { %2346 = vmatpush3.bf16.msra.mxu0 %v2481_v49  ;;  %2366 = vmatpush3.bf16.msra.mxu1 %v2481_v49 }
 0x585   :  { %2371 = vmatprep.subr.bf16.mxu0 %v2482_v50  ;;  %2391 = vmatprep.subr.bf16.mxu1 %v2482_v50 }
 0x63a   :  { %v2309_v52 = vpop.f32.mrb[24].mxu0  ;;  %v2329_v53 = vpop.f32.mrb[24].mxu1 }
 0x63b   :  { %v1273_v54 = vadd.f32 %v2309_v52, %v1803_v51  ;;  %v1328_v55 = vadd.f32 %v2329_v53, %v1803_v51  ;;  %v1264_v56 = vpop.f32.mrb[25].mxu0  ;;  %v1319_v57 = vpop.f32.mrb[25].mxu1  ;;  %v1823_v53 = vld [vmem:[%s2602_s2 + $0x8] ss:$0 sm:$0xff] }
 0x63c   :  { %v1265_v58 = vadd.f32 %v1803_v51, %v1264_v56  ;;  %v1320_v59 = vadd.f32 %v1803_v51, %v1319_v57  ;;  %v2310_v60 = vpop.f32.mrb[26].mxu0  ;;  %v2330_v61 = vpop.f32.mrb[26].mxu1 }
 0x63d   :  { %v1276_v62 = vadd.f32 %v2310_v60, %v1803_v51  ;;  %v1331_v63 = vadd.f32 %v2330_v61, %v1803_v51  ;;  %v1267_v0 = vpop.f32.mrb[27].mxu0  ;;  %v1322_v1 = vpop.f32.mrb[27].mxu1  ;;  %v1281_v4 = vmax.f32 %v1273_v54, 0.0  ;;  %v1336_v5 = vmax.f32 %v1328_v55, 0.0 }
 0x63e   :  { %v1268_v2 = vadd.f32 %v1803_v51, %v1267_v0  ;;  %v1323_v3 = vadd.f32 %v1803_v51, %v1322_v1  ;;  %v1279_v8 = vmax.f32 %v1265_v58, 0.0  ;;  %v1334_v9 = vmax.f32 %v1320_v59, 0.0 }
 0x63f   :  { %v1282_v6 = vmax.f32 %v1276_v62, 0.0  ;;  %v1337_v7 = vmax.f32 %v1331_v63, 0.0 }
 0x640   :  { %v1280_v10 = vmax.f32 %v1268_v2, 0.0  ;;  %v1335_v11 = vmax.f32 %v1323_v3, 0.0 }
 0x641   :  { %v1284_v12 = vpack.c.bf16 %v1282_v6, %v1281_v4  ;;  %v1339_v13 = vpack.c.bf16 %v1337_v7, %v1336_v5 }
 0x642   :  { %v1283_v14 = vpack.c.bf16 %v1280_v10, %v1279_v8  ;;  %v1338_v15 = vpack.c.bf16 %v1335_v11, %v1334_v9 }
 0x644   :  { %2347 = vmatprep.mubr.bf16.mxu0 %v1283_v14  ;;  %2367 = vmatprep.mubr.bf16.mxu1 %v1338_v15 }
 0x645   :  { %2348 = vmatmul.mubr.bf16.vlgmr.msra.gmra.mrb[28].mxu0 %v1284_v12  ;;  %2368 = vmatmul.mubr.bf16.vlgmr.msra.gmra.mrb[28].mxu1 %v1339_v13 }
 0x646   :  { %2372 = vmatpush3.bf16.msra.mxu0 %v2482_v50  ;;  %2392 = vmatpush3.bf16.msra.mxu1 %v2482_v50 }
 0x647   :  { %2373 = vmatprep.subr.bf16.mxu0 %v2483_v16  ;;  %2393 = vmatprep.subr.bf16.mxu1 %v2483_v16 }
 0x64a   :  { %2374 = vmatpush3.bf16.msra.mxu0 %v2483_v16  ;;  %2394 = vmatpush3.bf16.msra.mxu1 %v2483_v16 }
 0x64b   :  { %2375 = vmatprep.subr.bf16.mxu0 %v2484_v17  ;;  %2395 = vmatprep.subr.bf16.mxu1 %v2484_v17 }
 0x64e   :  { %2376 = vmatpush3.bf16.msra.mxu0 %v2484_v17  ;;  %2396 = vmatpush3.bf16.msra.mxu1 %v2484_v17 }
 0x64f   :  { %2377 = vmatprep.subr.bf16.mxu0 %v2485_v18  ;;  %2397 = vmatprep.subr.bf16.mxu1 %v2485_v18 }
 0x652   :  { %2378 = vmatpush3.bf16.msra.mxu0 %v2485_v18  ;;  %2398 = vmatpush3.bf16.msra.mxu1 %v2485_v18 }
 0x653   :  { %2379 = vmatprep.subr.bf16.mxu0 %v2486_v19  ;;  %2399 = vmatprep.subr.bf16.mxu1 %v2486_v19 }
 0x656   :  { %2380 = vmatpush3.bf16.msra.mxu0 %v2486_v19  ;;  %2400 = vmatpush3.bf16.msra.mxu1 %v2486_v19 }
 0x657   :  { %2381 = vmatprep.subr.bf16.mxu0 %v2487_v20  ;;  %2401 = vmatprep.subr.bf16.mxu1 %v2487_v20 }
 0x65a   :  { %2382 = vmatpush3.bf16.msra.mxu0 %v2487_v20  ;;  %2402 = vmatpush3.bf16.msra.mxu1 %v2487_v20 }
 0x65b   :  { %2383 = vmatprep.subr.bf16.mxu0 %v2488_v21  ;;  %2403 = vmatprep.subr.bf16.mxu1 %v2488_v21 }
 0x65e   :  { %2384 = vmatpush3.bf16.msra.mxu0 %v2488_v21  ;;  %2404 = vmatpush3.bf16.msra.mxu1 %v2488_v21 }
 0x65f   :  { %2385 = vmatprep.subr.bf16.mxu0 %v2489_v22  ;;  %2405 = vmatprep.subr.bf16.mxu1 %v2489_v22 }
 0x662   :  { %2386 = vmatpush3.bf16.msra.mxu0 %v2489_v22  ;;  %2406 = vmatpush3.bf16.msra.mxu1 %v2489_v22 }
 0x718   :  { %v2349_v24 = vpop.f32.mrb[28].mxu0  ;;  %v2369_v25 = vpop.f32.mrb[28].mxu1 }
 0x719   :  { %v1456_v26 = vadd.f32 %v2349_v24, %v1813_v23  ;;  %v1511_v27 = vadd.f32 %v2369_v25, %v1813_v23  ;;  %v1447_v28 = vpop.f32.mrb[29].mxu0  ;;  %v1502_v29 = vpop.f32.mrb[29].mxu1 }
 0x71a   :  { %v1448_v30 = vadd.f32 %v1813_v23, %v1447_v28  ;;  %v1503_v31 = vadd.f32 %v1813_v23, %v1502_v29  ;;  %v2350_v32 = vpop.f32.mrb[30].mxu0  ;;  %v2370_v33 = vpop.f32.mrb[30].mxu1 }
 0x71b   :  { %v1459_v34 = vadd.f32 %v2350_v32, %v1813_v23  ;;  %v1514_v35 = vadd.f32 %v2370_v33, %v1813_v23  ;;  %v1450_v36 = vpop.f32.mrb[31].mxu0  ;;  %v1505_v37 = vpop.f32.mrb[31].mxu1  ;;  %v1464_v40 = vmax.f32 %v1456_v26, 0.0  ;;  %v1519_v41 = vmax.f32 %v1511_v27, 0.0 }
 0x71c   :  { %v1451_v38 = vadd.f32 %v1813_v23, %v1450_v36  ;;  %v1506_v39 = vadd.f32 %v1813_v23, %v1505_v37  ;;  %v1462_v44 = vmax.f32 %v1448_v30, 0.0  ;;  %v1517_v45 = vmax.f32 %v1503_v31, 0.0 }
 0x71d   :  { %v1465_v42 = vmax.f32 %v1459_v34, 0.0  ;;  %v1520_v43 = vmax.f32 %v1514_v35, 0.0 }
 0x71e   :  { %v1463_v46 = vmax.f32 %v1451_v38, 0.0  ;;  %v1518_v47 = vmax.f32 %v1506_v39, 0.0 }
 0x71f   :  { %v1467_v48 = vpack.c.bf16 %v1465_v42, %v1464_v40  ;;  %v1522_v49 = vpack.c.bf16 %v1520_v43, %v1519_v41 }
 0x720   :  { %v1466_v50 = vpack.c.bf16 %v1463_v46, %v1462_v44  ;;  %v1521_v51 = vpack.c.bf16 %v1518_v47, %v1517_v45 }
 0x722   :  { %2387 = vmatprep.mubr.bf16.mxu0 %v1466_v50  ;;  %2407 = vmatprep.mubr.bf16.mxu1 %v1521_v51 }
 0x723   :  { %2388 = vmatmul.mubr.bf16.vlgmr.msra.gmra.mrb[32].mxu0 %v1467_v48  ;;  %2408 = vmatmul.mubr.bf16.vlgmr.msra.gmra.mrb[32].mxu1 %v1522_v49 }
 0x7f6   :  { %v2389_v52 = vpop.f32.mrb[32].mxu0  ;;  %v2409_v54 = vpop.f32.mrb[32].mxu1 }
 0x7f7   :  { %v1630_v55 = vpop.f32.mrb[33].mxu0  ;;  %v1681_v56 = vpop.f32.mrb[33].mxu1  ;;  %v1639_v59 = vadd.f32 %v2389_v52, %v1823_v53  ;;  %v1690_v60 = vadd.f32 %v2409_v54, %v1823_v53 }
 0x7f8   :  { %v2390_v57 = vpop.f32.mrb[34].mxu0  ;;  %v2410_v58 = vpop.f32.mrb[34].mxu1  ;;  %v1631_v1 = vadd.f32 %v1823_v53, %v1630_v55  ;;  %v1682_v2 = vadd.f32 %v1823_v53, %v1681_v56 }
 0x7f9   :  { %v1642_v61 = vadd.f32 %v2390_v57, %v1823_v53  ;;  %v1693_v62 = vadd.f32 %v2410_v58, %v1823_v53  ;;  %v1633_v63 = vpop.f32.mrb[35].mxu0  ;;  %v1684_v0 = vpop.f32.mrb[35].mxu1 }
 0x7fa   :  { %v1634_v3 = vadd.f32 %v1823_v53, %v1633_v63  ;;  %v1685_v4 = vadd.f32 %v1823_v53, %v1684_v0 }
 0x7fb   :  { %v1856_v5 = vpack.c.bf16 %v1642_v61, %v1639_v59  ;;  %v1866_v6 = vpack.c.bf16 %v1693_v62, %v1690_v60 }
 0x7fc   :  { %v1851_v7 = vpack.c.bf16 %v1634_v3, %v1631_v1  ;;  %v1861_v8 = vpack.c.bf16 %v1685_v4, %v1682_v2 }
 0x7fd   :  { %1868 = vst [vmem:[%s2603_s3 + $0x8] sm:$0xff] %v1856_v5   ;;  %1870 = vst [vmem:[%s2603_s3 + $0x18] sm:$0xff] %v1866_v6  }
 0x7fe   :  { %1852 = vst [vmem:[%s2603_s3] sm:$0xff] %v1851_v7   ;;  %1869 = vst [vmem:[%s2603_s3 + $0x10] sm:$0xff] %v1861_v8  }
 0x7ff   :  { %1738 = vsyncpa [#allocation3], 1 }

</bundles_post_ra>
